<compile_context>
chip_gen: v6e
topology: v6e:2x2x1
jax: 0.10.0
libtpu: 0.0.40
codegen_flags: <defaults>
</compile_context>

<pallas_src>
import functools

import jax
import jax.numpy as jnp
from jax.experimental import pallas as pl
from jax.experimental.pallas import tpu as pltpu


# ----------------------------------------------------------------------------
# Kernel
# ----------------------------------------------------------------------------
def _actor_kernel(x_ref, w_ref, b_ref, mu_ref, *, seq_len, channels, kernel_size):
    T, C, K = seq_len, channels, kernel_size
    f32 = jnp.float32
    mm_dt = w_ref.dtype          # bf16 matmul operands, f32 accumulation

    # Static row offsets into the packed weight slab (all multiples of C,
    # hence 8-sublane aligned -> zero-cost ref views).
    off_c1 = 0
    off_c2 = K * C
    off_se1 = 2 * K * C
    off_se2 = off_se1 + C
    off_m1 = off_se2 + C
    off_m2 = off_m1 + C
    off_m3 = off_m2 + C
    # Bias slab rows (c1, c2, se1, se2, m1, m2, m3).
    B_C1, B_C2, B_SE1, B_SE2, B_M1, B_M2, B_M3 = range(7)

    def bias(row):
        return b_ref[row:row + 1, :]                              # (1, C) f32

    def lin(h, w_off, b_row):
        w = w_ref[w_off:w_off + C, :]                             # (C, C) bf16
        return jnp.dot(h.astype(mm_dt), w, preferred_element_type=f32) + bias(b_row)

    x = x_ref[...]                                                # (B, T*C) f32

    def causal_conv(h_flat, w_off, b_row):
        # Causal conv (dilation=1, padding=K-1 + Chomp), unrolled over the
        # small static T.  Output step t consumes input steps
        # max(0, t-K+1)..t, which in the (B, T*C) lane layout is ONE
        # contiguous 128-aligned lane block -> one MXU dot per step against
        # an 8-aligned static row slice of the packed (K*C, C) conv weight.
        b = bias(b_row)
        outs = []
        for t in range(T):
            lo = max(0, t - (K - 1))
            ntap = t - lo + 1
            k0 = (K - 1) - (t - lo)                               # first tap index
            lhs = h_flat[:, lo * C:(t + 1) * C]                   # (B, ntap*C)
            w = w_ref[w_off + k0 * C: w_off + (k0 + ntap) * C, :]  # (ntap*C, C)
            outs.append(jnp.dot(lhs.astype(mm_dt), w,
                                preferred_element_type=f32) + b)
        return outs

    # TemporalBlock: conv1 -> Chomp -> ReLU -> conv2 -> Chomp -> ReLU (p=0).
    h1s = [jnp.maximum(o, 0.0) for o in causal_conv(x, off_c1, B_C1)]
    h1_flat = jnp.concatenate(h1s, axis=-1)                       # lane-aligned
    outs = [jnp.maximum(o, 0.0) for o in causal_conv(h1_flat, off_c2, B_C2)]

    # SEBlock gate from the time-average (adaptive_avg_pool1d): plain VPU adds.
    pooled = outs[0]
    for t in range(1, T):
        pooled = pooled + outs[t]
    pooled = pooled * (1.0 / T)
    hse = jnp.maximum(lin(pooled, off_se1, B_SE1), 0.0)
    gate = jax.nn.sigmoid(lin(hse, off_se2, B_SE2))

    # TemporalBlock tail — only the last timestep is consumed downstream
    # (TCNEncoder returns z[..., -1]; everything below the gate is
    # elementwise, so carrying only t=T-1 is exact):
    #   out = senet(out) * out = gate * out^2 ; residual (downsample=None) ; ReLU.
    x_last = x[:, (T - 1) * C: T * C]
    out_last = outs[T - 1]
    g = jnp.maximum(gate * out_last * out_last + x_last, 0.0)     # (B, C) f32

    # MLP head (Net) + tanh.  Zero-padded lanes stay exactly zero (zero
    # weights & biases), so no column slicing is needed until the wrapper.
    h = jnp.maximum(lin(g, off_m1, B_M1), 0.0)
    h = jnp.maximum(lin(h, off_m2, B_M2), 0.0)
    mu_ref[...] = jnp.tanh(lin(h, off_m3, B_M3))


# ----------------------------------------------------------------------------
# One-time parameter preparation (hoisted out of the per-call path).
# ----------------------------------------------------------------------------
def prepare_actor_params(params, matmul_dtype=jnp.bfloat16):
    """Pack all weights into one bf16 slab and all biases into one f32 slab.

    Call ONCE (e.g. after loading a checkpoint); the forward pass then reads
    the bf16 weights directly (half the DMA bytes, no per-call cast pass).
    """
    K, C, _ = params['c1w'].shape
    assert C % 128 == 0, "channel dim must be lane-aligned (multiple of 128)"

    def pad_to(a, rows, cols):
        r, c = a.shape
        assert r <= rows and c <= cols, "linear dims must be <= num_observations"
        return jnp.pad(a, ((0, rows - r), (0, cols - c)))

    w_blocks = [
        params['c1w'].reshape(K * C, C),
        params['c2w'].reshape(K * C, C),
        pad_to(params['se1w'], C, C),
        pad_to(params['se2w'], C, C),
        pad_to(params['m1w'], C, C),
        pad_to(params['m2w'], C, C),
        pad_to(params['m3w'], C, C),
    ]
    w_slab = jnp.concatenate(w_blocks, axis=0).astype(matmul_dtype)   # ((2K+5)*C, C)

    b_names = ('c1b', 'c2b', 'se1b', 'se2b', 'm1b', 'm2b', 'm3b')
    b_slab = jnp.concatenate([pad_to(params[n], 1, C) for n in b_names],
                             axis=0).astype(jnp.float32)              # (7, C)
    return w_slab, b_slab


# ----------------------------------------------------------------------------
# Forward wrapper
# ----------------------------------------------------------------------------
def actor_forward(s, w_slab, b_slab, std, *, num_actions, kernel_size=3):
    """s: (B, T, C) observations.  Returns eval-mode dict {'logits', 'act'}."""
    B, T, C = s.shape
    K = kernel_size
    assert w_slab.shape == ((2 * K + 5) * C, C)

    # Layout plumbing only: lane-dense (B, T*C) slab (row b = [x_b0 x_b1 ...]).
    x = s.astype(jnp.float32).reshape(B, T * C)

    mu_pad = pl.pallas_call(
        functools.partial(_actor_kernel, seq_len=T, channels=C, kernel_size=K),
        out_shape=jax.ShapeDtypeStruct((B, C), jnp.float32),
        grid=(1,),
        in_specs=[
            pl.BlockSpec((B, T * C), lambda i: (0, 0)),
            pl.BlockSpec(w_slab.shape, lambda i: (0, 0)),
            pl.BlockSpec(b_slab.shape, lambda i: (0, 0)),
        ],
        out_specs=pl.BlockSpec((B, C), lambda i: (0, 0)),
        compiler_params=pltpu.CompilerParams(
            dimension_semantics=("arbitrary",)),
    )(x, w_slab, b_slab)

    mu = mu_pad[:, :num_actions]          # drop zero-padded lanes
    # deploy=False, eval mode: {'logits': (mu, std), 'act': mu}
    return {'logits': (mu, std), 'act': mu}


# ----------------------------------------------------------------------------
# Pure-JAX reference (independent formulation: padded-time per-tap conv).
# ----------------------------------------------------------------------------
def actor_forward_ref(s, params, std, *, matmul_dtype=None):
    """matmul_dtype=None -> f32 module semantics; jnp.bfloat16 -> mirrors the
    kernel's bf16-operand / f32-accumulate matmul policy."""
    x = s.astype(jnp.float32)
    B, T, C = x.shape
    K = params['c1w'].shape[0]
    f32 = jnp.float32
    cast = (lambda a: a) if matmul_dtype is None else (lambda a: a.astype(matmul_dtype))

    def mm(a, bm):
        return jnp.dot(cast(a), cast(bm), preferred_element_type=f32)

    def causal_conv(h, wgt, bias):
        pad = jnp.concatenate([jnp.zeros((B, K - 1, C), f32), h], axis=1)
        acc = jnp.broadcast_to(bias, (B, T, wgt.shape[2]))
        for k in range(K):
            acc = acc + jnp.einsum('btc,cd->btd', cast(pad[:, k:k + T, :]),
                                   cast(wgt[k]), preferred_element_type=f32)
        return acc

    h1 = jax.nn.relu(causal_conv(x, params['c1w'], params['c1b']))
    out = jax.nn.relu(causal_conv(h1, params['c2w'], params['c2b']))
    pooled = jnp.mean(out, axis=1)
    h = jax.nn.relu(mm(pooled, params['se1w']) + params['se1b'])
    gate = jax.nn.sigmoid(mm(h, params['se2w']) + params['se2b'])
    out = gate[:, None, :] * out * out
    y = jax.nn.relu(out + x)
    g = y[:, T - 1, :]
    h = jax.nn.relu(mm(g, params['m1w']) + params['m1b'])
    h = jax.nn.relu(mm(h, params['m2w']) + params['m2b'])
    mu = jnp.tanh(mm(h, params['m3w']) + params['m3b'])
    return {'logits': (mu, std), 'act': mu}


# ----------------------------------------------------------------------------
# Parameter init (weight_norm(Conv1d) folded into effective weights).
# ----------------------------------------------------------------------------
def init_params(key, num_observations, num_actions, hidden_layers, kernel_size=3):
    C, K = num_observations, kernel_size
    Cse = int(C / 16)
    H1, H2 = hidden_layers
    ks = jax.random.split(key, 14)

    def normal(k, shape, scale):
        return (scale * jax.random.normal(k, shape)).astype(jnp.float32)

    params = {
        # effective conv weights stored as (K, C_in, C_out)
        'c1w': normal(ks[0], (K, C, C), 0.08),
        'c1b': normal(ks[1], (1, C), 0.05),
        'c2w': normal(ks[2], (K, C, C), 0.08),
        'c2b': normal(ks[3], (1, C), 0.05),
        # SEBlock linears (stored (in, out))
        'se1w': normal(ks[4], (C, Cse), 0.15),
        'se1b': normal(ks[5], (1, Cse), 0.05),
        'se2w': normal(ks[6], (Cse, C), 0.15),
        'se2b': normal(ks[7], (1, C), 0.05),
        # MLP head (Net) linears
        'm1w': normal(ks[8], (C, H1), 0.1),
        'm1b': normal(ks[9], (1, H1), 0.05),
        'm2w': normal(ks[10], (H1, H2), 0.1),
        'm2b': normal(ks[11], (1, H2), 0.05),
        'm3w': normal(ks[12], (H2, num_actions), 0.1),
        'm3b': normal(ks[13], (1, num_actions), 0.05),
    }
    std = jnp.ones((num_actions,), jnp.float32)   # self.std = nn.Parameter(ones * 1)
    return params, std


if __name__ == "__main__":
    # Small shapes consistent with the module: num_observations=128, seq_len=3,
    # num_actions=12, hidden_layers=(64, 32), batch=4.
    B, T, C, A = 4, 3, 128, 12
    hidden_layers = (64, 32)

    key = jax.random.PRNGKey(0)
    kp, kx = jax.random.split(key)
    params, std = init_params(kp, C, A, hidden_layers)
    s = jax.random.normal(kx, (B, T, C), dtype=jnp.float32)

    # One-time weight packing (kept out of the per-call path).
    w_slab, b_slab = prepare_actor_params(params)
    fwd = jax.jit(functools.partial(actor_forward, num_actions=A, kernel_size=3))

    out = fwd(s, w_slab, b_slab, std)
    mu = jax.block_until_ready(out['act'])
    assert mu.shape == (B, A)

    # Matched-precision reference (same bf16-operand / f32-accumulate policy,
    # independent padded-time conv formulation): catches structural bugs.
    ref_bf16 = actor_forward_ref(s, params, std, matmul_dtype=jnp.bfloat16)['act']
    assert jnp.allclose(mu, ref_bf16, rtol=2e-2, atol=2e-2), \
        "mismatch vs matched-precision JAX reference"

    # Full-f32 reference (module semantics): confirms the bf16 MXU-operand
    # policy is a negligible perturbation.
    ref_f32 = actor_forward_ref(s, params, std)['act']
    assert jnp.allclose(mu, ref_f32, rtol=1e-1, atol=1e-1), \
        "mismatch vs f32 JAX reference"

    print("KERNEL_OK")
</pallas_src>

<mosaic_0001>
module attributes {stable_mosaic.version = 11 : i64} {
  func.func @_actor_kernel(%arg0: i32, %arg1: memref<4x384xf32, #tpu.memory_space<vmem>>, %arg2: memref<1408x128xbf16, #tpu.memory_space<vmem>>, %arg3: memref<7x128xf32, #tpu.memory_space<vmem>>, %arg4: memref<4x128xf32, #tpu.memory_space<vmem>>) attributes {dimension_semantics = [#tpu.dimension_semantics<arbitrary>], iteration_bounds = array<i64: 1>, scalar_prefetch = 0 : i64, scratch_operands = 0 : i64, tpu.core_type = #tpu.core_type<tc>, window_params = [{pipeline_mode = #tpu.pipeline_mode<synchronous>, transform_indices = @transform_0, window_bounds = array<i64: 4, 384>}, {pipeline_mode = #tpu.pipeline_mode<synchronous>, transform_indices = @transform_1, window_bounds = array<i64: 1408, 128>}, {pipeline_mode = #tpu.pipeline_mode<synchronous>, transform_indices = @transform_2, window_bounds = array<i64: 7, 128>}, {pipeline_mode = #tpu.pipeline_mode<synchronous>, transform_indices = @transform_3, window_bounds = array<i64: 4, 128>}]} {
    %c0 = arith.constant 0 : index
    %c0_0 = arith.constant 0 : index
    %0 = vector.load %arg1[%c0, %c0_0] : memref<4x384xf32, #tpu.memory_space<vmem>>, vector<4x384xf32>
    %c0_1 = arith.constant 0 : index
    %c0_2 = arith.constant 0 : index
    %1 = vector.load %arg3[%c0_1, %c0_2] : memref<7x128xf32, #tpu.memory_space<vmem>>, vector<1x128xf32>
    %2 = vector.extract_strided_slice %0 {offsets = [0, 0], sizes = [4, 128], strides = [1, 1]} : vector<4x384xf32> to vector<4x128xf32>
    %c256 = arith.constant 256 : index
    %c0_3 = arith.constant 0 : index
    %3 = vector.load %arg2[%c256, %c0_3] : memref<1408x128xbf16, #tpu.memory_space<vmem>>, vector<128x128xbf16>
    %4 = arith.truncf %2 : vector<4x128xf32> to vector<4x128xbf16>
    %cst = arith.constant dense<0.000000e+00> : vector<4x128xf32>
    %5 = tpu.matmul %4, %3, %cst {dimension_numbers = #tpu.dot_dimension_numbers<[1], [0], [0], [1], [0, 0, 1, 1], [], []>} : vector<4x128xbf16>, vector<128x128xbf16>, vector<4x128xf32> -> vector<4x128xf32>
    %6 = vector.broadcast %1 : vector<1x128xf32> to vector<4x128xf32>
    %7 = arith.addf %5, %6 : vector<4x128xf32>
    %8 = vector.extract_strided_slice %0 {offsets = [0, 0], sizes = [4, 256], strides = [1, 1]} : vector<4x384xf32> to vector<4x256xf32>
    %c128 = arith.constant 128 : index
    %c0_4 = arith.constant 0 : index
    %9 = vector.load %arg2[%c128, %c0_4] : memref<1408x128xbf16, #tpu.memory_space<vmem>>, vector<256x128xbf16>
    %10 = arith.truncf %8 : vector<4x256xf32> to vector<4x256xbf16>
    %cst_5 = arith.constant dense<0.000000e+00> : vector<4x128xf32>
    %11 = tpu.matmul %10, %9, %cst_5 {dimension_numbers = #tpu.dot_dimension_numbers<[1], [0], [0], [1], [0, 0, 1, 1], [], []>} : vector<4x256xbf16>, vector<256x128xbf16>, vector<4x128xf32> -> vector<4x128xf32>
    %12 = vector.broadcast %1 : vector<1x128xf32> to vector<4x128xf32>
    %13 = arith.addf %11, %12 : vector<4x128xf32>
    %c0_6 = arith.constant 0 : index
    %c0_7 = arith.constant 0 : index
    %14 = vector.load %arg2[%c0_6, %c0_7] : memref<1408x128xbf16, #tpu.memory_space<vmem>>, vector<384x128xbf16>
    %15 = arith.truncf %0 : vector<4x384xf32> to vector<4x384xbf16>
    %cst_8 = arith.constant dense<0.000000e+00> : vector<4x128xf32>
    %16 = tpu.matmul %15, %14, %cst_8 {dimension_numbers = #tpu.dot_dimension_numbers<[1], [0], [0], [1], [0, 0, 1, 1], [], []>} : vector<4x384xbf16>, vector<384x128xbf16>, vector<4x128xf32> -> vector<4x128xf32>
    %17 = vector.broadcast %1 : vector<1x128xf32> to vector<4x128xf32>
    %18 = arith.addf %16, %17 : vector<4x128xf32>
    %cst_9 = arith.constant 0.000000e+00 : f32
    %19 = vector.broadcast %cst_9 : f32 to vector<4x128xf32>
    %20 = arith.maximumf %7, %19 : vector<4x128xf32>
    %cst_10 = arith.constant 0.000000e+00 : f32
    %21 = vector.broadcast %cst_10 : f32 to vector<4x128xf32>
    %22 = arith.maximumf %13, %21 : vector<4x128xf32>
    %cst_11 = arith.constant 0.000000e+00 : f32
    %23 = vector.broadcast %cst_11 : f32 to vector<4x128xf32>
    %24 = arith.maximumf %18, %23 : vector<4x128xf32>
    %25 = tpu.concatenate %20, %22, %24 in 1 : vector<4x128xf32>, vector<4x128xf32>, vector<4x128xf32> -> vector<4x384xf32>
    %c1 = arith.constant 1 : index
    %c0_12 = arith.constant 0 : index
    %26 = vector.load %arg3[%c1, %c0_12] : memref<7x128xf32, #tpu.memory_space<vmem>>, vector<1x128xf32>
    %27 = vector.extract_strided_slice %25 {offsets = [0, 0], sizes = [4, 128], strides = [1, 1]} : vector<4x384xf32> to vector<4x128xf32>
    %c640 = arith.constant 640 : index
    %c0_13 = arith.constant 0 : index
    %28 = vector.load %arg2[%c640, %c0_13] : memref<1408x128xbf16, #tpu.memory_space<vmem>>, vector<128x128xbf16>
    %29 = arith.truncf %27 : vector<4x128xf32> to vector<4x128xbf16>
    %cst_14 = arith.constant dense<0.000000e+00> : vector<4x128xf32>
    %30 = tpu.matmul %29, %28, %cst_14 {dimension_numbers = #tpu.dot_dimension_numbers<[1], [0], [0], [1], [0, 0, 1, 1], [], []>} : vector<4x128xbf16>, vector<128x128xbf16>, vector<4x128xf32> -> vector<4x128xf32>
    %31 = vector.broadcast %26 : vector<1x128xf32> to vector<4x128xf32>
    %32 = arith.addf %30, %31 : vector<4x128xf32>
    %33 = vector.extract_strided_slice %25 {offsets = [0, 0], sizes = [4, 256], strides = [1, 1]} : vector<4x384xf32> to vector<4x256xf32>
    %c512 = arith.constant 512 : index
    %c0_15 = arith.constant 0 : index
    %34 = vector.load %arg2[%c512, %c0_15] : memref<1408x128xbf16, #tpu.memory_space<vmem>>, vector<256x128xbf16>
    %35 = arith.truncf %33 : vector<4x256xf32> to vector<4x256xbf16>
    %cst_16 = arith.constant dense<0.000000e+00> : vector<4x128xf32>
    %36 = tpu.matmul %35, %34, %cst_16 {dimension_numbers = #tpu.dot_dimension_numbers<[1], [0], [0], [1], [0, 0, 1, 1], [], []>} : vector<4x256xbf16>, vector<256x128xbf16>, vector<4x128xf32> -> vector<4x128xf32>
    %37 = vector.broadcast %26 : vector<1x128xf32> to vector<4x128xf32>
    %38 = arith.addf %36, %37 : vector<4x128xf32>
    %c384 = arith.constant 384 : index
    %c0_17 = arith.constant 0 : index
    %39 = vector.load %arg2[%c384, %c0_17] : memref<1408x128xbf16, #tpu.memory_space<vmem>>, vector<384x128xbf16>
    %40 = arith.truncf %25 : vector<4x384xf32> to vector<4x384xbf16>
    %cst_18 = arith.constant dense<0.000000e+00> : vector<4x128xf32>
    %41 = tpu.matmul %40, %39, %cst_18 {dimension_numbers = #tpu.dot_dimension_numbers<[1], [0], [0], [1], [0, 0, 1, 1], [], []>} : vector<4x384xbf16>, vector<384x128xbf16>, vector<4x128xf32> -> vector<4x128xf32>
    %42 = vector.broadcast %26 : vector<1x128xf32> to vector<4x128xf32>
    %43 = arith.addf %41, %42 : vector<4x128xf32>
    %cst_19 = arith.constant 0.000000e+00 : f32
    %44 = vector.broadcast %cst_19 : f32 to vector<4x128xf32>
    %45 = arith.maximumf %32, %44 : vector<4x128xf32>
    %cst_20 = arith.constant 0.000000e+00 : f32
    %46 = vector.broadcast %cst_20 : f32 to vector<4x128xf32>
    %47 = arith.maximumf %38, %46 : vector<4x128xf32>
    %cst_21 = arith.constant 0.000000e+00 : f32
    %48 = vector.broadcast %cst_21 : f32 to vector<4x128xf32>
    %49 = arith.maximumf %43, %48 : vector<4x128xf32>
    %50 = arith.addf %45, %47 : vector<4x128xf32>
    %51 = arith.addf %50, %49 : vector<4x128xf32>
    %cst_22 = arith.constant 0.333333343 : f32
    %52 = vector.broadcast %cst_22 : f32 to vector<4x128xf32>
    %53 = arith.mulf %51, %52 : vector<4x128xf32>
    %c768 = arith.constant 768 : index
    %c0_23 = arith.constant 0 : index
    %54 = vector.load %arg2[%c768, %c0_23] : memref<1408x128xbf16, #tpu.memory_space<vmem>>, vector<128x128xbf16>
    %55 = arith.truncf %53 : vector<4x128xf32> to vector<4x128xbf16>
    %cst_24 = arith.constant dense<0.000000e+00> : vector<4x128xf32>
    %56 = tpu.matmul %55, %54, %cst_24 {dimension_numbers = #tpu.dot_dimension_numbers<[1], [0], [0], [1], [0, 0, 1, 1], [], []>} : vector<4x128xbf16>, vector<128x128xbf16>, vector<4x128xf32> -> vector<4x128xf32>
    %c2 = arith.constant 2 : index
    %c0_25 = arith.constant 0 : index
    %57 = vector.load %arg3[%c2, %c0_25] : memref<7x128xf32, #tpu.memory_space<vmem>>, vector<1x128xf32>
    %58 = vector.broadcast %57 : vector<1x128xf32> to vector<4x128xf32>
    %59 = arith.addf %56, %58 : vector<4x128xf32>
    %cst_26 = arith.constant 0.000000e+00 : f32
    %60 = vector.broadcast %cst_26 : f32 to vector<4x128xf32>
    %61 = arith.maximumf %59, %60 : vector<4x128xf32>
    %c896 = arith.constant 896 : index
    %c0_27 = arith.constant 0 : index
    %62 = vector.load %arg2[%c896, %c0_27] : memref<1408x128xbf16, #tpu.memory_space<vmem>>, vector<128x128xbf16>
    %63 = arith.truncf %61 : vector<4x128xf32> to vector<4x128xbf16>
    %cst_28 = arith.constant dense<0.000000e+00> : vector<4x128xf32>
    %64 = tpu.matmul %63, %62, %cst_28 {dimension_numbers = #tpu.dot_dimension_numbers<[1], [0], [0], [1], [0, 0, 1, 1], [], []>} : vector<4x128xbf16>, vector<128x128xbf16>, vector<4x128xf32> -> vector<4x128xf32>
    %c3 = arith.constant 3 : index
    %c0_29 = arith.constant 0 : index
    %65 = vector.load %arg3[%c3, %c0_29] : memref<7x128xf32, #tpu.memory_space<vmem>>, vector<1x128xf32>
    %66 = vector.broadcast %65 : vector<1x128xf32> to vector<4x128xf32>
    %67 = arith.addf %64, %66 : vector<4x128xf32>
    %68 = arith.negf %67 : vector<4x128xf32>
    %69 = math.exp %68 : vector<4x128xf32>
    %cst_30 = arith.constant 1.000000e+00 : f32
    %70 = vector.broadcast %cst_30 : f32 to vector<4x128xf32>
    %71 = arith.addf %70, %69 : vector<4x128xf32>
    %72 = arith.divf %70, %71 : vector<4x128xf32>
    %73 = vector.extract_strided_slice %0 {offsets = [0, 256], sizes = [4, 128], strides = [1, 1]} : vector<4x384xf32> to vector<4x128xf32>
    %74 = arith.mulf %72, %49 : vector<4x128xf32>
    %75 = arith.mulf %74, %49 : vector<4x128xf32>
    %76 = arith.addf %75, %73 : vector<4x128xf32>
    %cst_31 = arith.constant 0.000000e+00 : f32
    %77 = vector.broadcast %cst_31 : f32 to vector<4x128xf32>
    %78 = arith.maximumf %76, %77 : vector<4x128xf32>
    %c1024 = arith.constant 1024 : index
    %c0_32 = arith.constant 0 : index
    %79 = vector.load %arg2[%c1024, %c0_32] : memref<1408x128xbf16, #tpu.memory_space<vmem>>, vector<128x128xbf16>
    %80 = arith.truncf %78 : vector<4x128xf32> to vector<4x128xbf16>
    %cst_33 = arith.constant dense<0.000000e+00> : vector<4x128xf32>
    %81 = tpu.matmul %80, %79, %cst_33 {dimension_numbers = #tpu.dot_dimension_numbers<[1], [0], [0], [1], [0, 0, 1, 1], [], []>} : vector<4x128xbf16>, vector<128x128xbf16>, vector<4x128xf32> -> vector<4x128xf32>
    %c4 = arith.constant 4 : index
    %c0_34 = arith.constant 0 : index
    %82 = vector.load %arg3[%c4, %c0_34] : memref<7x128xf32, #tpu.memory_space<vmem>>, vector<1x128xf32>
    %83 = vector.broadcast %82 : vector<1x128xf32> to vector<4x128xf32>
    %84 = arith.addf %81, %83 : vector<4x128xf32>
    %cst_35 = arith.constant 0.000000e+00 : f32
    %85 = vector.broadcast %cst_35 : f32 to vector<4x128xf32>
    %86 = arith.maximumf %84, %85 : vector<4x128xf32>
    %c1152 = arith.constant 1152 : index
    %c0_36 = arith.constant 0 : index
    %87 = vector.load %arg2[%c1152, %c0_36] : memref<1408x128xbf16, #tpu.memory_space<vmem>>, vector<128x128xbf16>
    %88 = arith.truncf %86 : vector<4x128xf32> to vector<4x128xbf16>
    %cst_37 = arith.constant dense<0.000000e+00> : vector<4x128xf32>
    %89 = tpu.matmul %88, %87, %cst_37 {dimension_numbers = #tpu.dot_dimension_numbers<[1], [0], [0], [1], [0, 0, 1, 1], [], []>} : vector<4x128xbf16>, vector<128x128xbf16>, vector<4x128xf32> -> vector<4x128xf32>
    %c5 = arith.constant 5 : index
    %c0_38 = arith.constant 0 : index
    %90 = vector.load %arg3[%c5, %c0_38] : memref<7x128xf32, #tpu.memory_space<vmem>>, vector<1x128xf32>
    %91 = vector.broadcast %90 : vector<1x128xf32> to vector<4x128xf32>
    %92 = arith.addf %89, %91 : vector<4x128xf32>
    %cst_39 = arith.constant 0.000000e+00 : f32
    %93 = vector.broadcast %cst_39 : f32 to vector<4x128xf32>
    %94 = arith.maximumf %92, %93 : vector<4x128xf32>
    %c1280 = arith.constant 1280 : index
    %c0_40 = arith.constant 0 : index
    %95 = vector.load %arg2[%c1280, %c0_40] : memref<1408x128xbf16, #tpu.memory_space<vmem>>, vector<128x128xbf16>
    %96 = arith.truncf %94 : vector<4x128xf32> to vector<4x128xbf16>
    %cst_41 = arith.constant dense<0.000000e+00> : vector<4x128xf32>
    %97 = tpu.matmul %96, %95, %cst_41 {dimension_numbers = #tpu.dot_dimension_numbers<[1], [0], [0], [1], [0, 0, 1, 1], [], []>} : vector<4x128xbf16>, vector<128x128xbf16>, vector<4x128xf32> -> vector<4x128xf32>
    %c6 = arith.constant 6 : index
    %c0_42 = arith.constant 0 : index
    %98 = vector.load %arg3[%c6, %c0_42] : memref<7x128xf32, #tpu.memory_space<vmem>>, vector<1x128xf32>
    %99 = vector.broadcast %98 : vector<1x128xf32> to vector<4x128xf32>
    %100 = arith.addf %97, %99 : vector<4x128xf32>
    %101 = math.tanh %100 : vector<4x128xf32>
    %c0_43 = arith.constant 0 : index
    %c0_44 = arith.constant 0 : index
    %102 = vector.load %arg4[%c0_43, %c0_44] : memref<4x128xf32, #tpu.memory_space<vmem>>, vector<4x128xf32>
    tpu.vector_store %arg4[%c0_43, %c0_44], %101 {strides = array<i32>} : memref<4x128xf32, #tpu.memory_space<vmem>>, vector<4x128xf32>,
    return
  }
  func.func @transform_0(%arg0: i32) -> (i32, i32) {
    %c0_i32 = arith.constant 0 : i32
    %c0_i32_0 = arith.constant 0 : i32
    %c0_i32_1 = arith.constant 0 : i32
    return %c0_i32, %c0_i32_0 : i32, i32
  }
  func.func @transform_1(%arg0: i32) -> (i32, i32) {
    %c0_i32 = arith.constant 0 : i32
    %c0_i32_0 = arith.constant 0 : i32
    %c0_i32_1 = arith.constant 0 : i32
    return %c0_i32, %c0_i32_0 : i32, i32
  }
  func.func @transform_2(%arg0: i32) -> (i32, i32) {
    %c0_i32 = arith.constant 0 : i32
    %c0_i32_0 = arith.constant 0 : i32
    %c0_i32_1 = arith.constant 0 : i32
    return %c0_i32, %c0_i32_0 : i32, i32
  }
  func.func @transform_3(%arg0: i32) -> (i32, i32) {
    %c0_i32 = arith.constant 0 : i32
    %c0_i32_0 = arith.constant 0 : i32
    %c0_i32_1 = arith.constant 0 : i32
    return %c0_i32, %c0_i32_0 : i32, i32
  }
}

</mosaic_0001>

<bundles_post_ra>
// kernel: actor_forward.1
= control target key start
LH: loop header
LB: loop body
LE: loop exit
PB: predicated region body
PF: predicated region fallthrough
CT: control target
= control target key end

     0   :  { %8 = vsyncpa [#allocation3], 0  ;;  %s2328_s0 = inlined_call_operand.hbm [shape: f32[4,384], index: 0, kind: input, shape index: {}]   ;;  %s2329_s1 = inlined_call_operand.hbm [shape: bf16[1408,128], index: 1, kind: input, shape index: {}]   ;;  %s2330_s2 = inlined_call_operand.hbm [shape: f32[7,128], index: 2, kind: input, shape index: {}]   ;;  %s2331_s3 = inlined_call_operand.vmem [shape: f32[4,128], index: 3, kind: output, shape index: {}]  }
   0x1   :  { %9 = vsyncpa [#allocation5], 0  ;;  %s2128_s12 = smov [#allocation4]  }
   0x2   :  { %s25_s13 = sshll.u32 %s2128_s12, 4  ;;  %s26_s13 = int_to_ptr.vmem [resolvable:$true] %s25_s13 }
   0x3   :  { %s2072_s14 = scalar_lea.vmem %s26_s13, 11264  ;;  %p2077_p1 = scmp.lt.s32.totalorder %s26_s13, %s26_s13 }
   0x4   :  { %p2073_p0 = scmp.ne.s32.totalorder %s26_s13, %s2072_s14  ;;  %p2078_p2 = scmp.lt.s32.totalorder %s2072_s14, %s2072_s14 }
   0x6   :  { %p2079_p3 = por %p2078_p2, %p2077_p1 }
   0x8   :  { %p2080_p4 = pnand %p2079_p3, %p2073_p0 }
   0xa   :  { %2083 = shalt.err (!%p2080_p4)
}
   0xb   :  { %s2129_s15 = smov 64   ;;  %s2130_s16 = smov 4  }
   0xc   :  { %31 = dma.hbm_to_vmem [thread:$0]  %s2329_s1, 11264, %s26_s13, [#allocation5], %s2129_s15, %s2129_s15, %s2130_s16  }
   0xd   :  { %s2131_s19 = smov [#allocation2]   ;;  %s2132_s21 = smov [#allocation6]  }
   0xe   :  { %s16_s20 = sshll.u32 %s2131_s19, 4  ;;  %s38_s22 = sshll.u32 %s2132_s21, 4  ;;  %s17_s20 = int_to_ptr.vmem [resolvable:$true] %s16_s20  ;;  %s39_s22 = int_to_ptr.vmem [resolvable:$true] %s38_s22 }
   0xf   :  { %s2092_s23 = scalar_lea.vmem %s17_s20, 192  ;;  %p2097_p6 = scmp.lt.s32.totalorder %s17_s20, %s17_s20 }
  0x10   :  { %p2093_p5 = scmp.ne.s32.totalorder %s17_s20, %s2092_s23  ;;  %p2098_p7 = scmp.lt.s32.totalorder %s2092_s23, %s2092_s23 }
  0x12   :  { %p2099_p8 = por %p2098_p7, %p2097_p6 }
  0x14   :  { %p2100_p9 = pnand %p2099_p8, %p2093_p5 }
  0x16   :  { %2103 = shalt.err (!%p2100_p9)
}
  0x17   :  { %19 = dma.hbm_to_vmem [thread:$0]  %s2328_s0, 192, %s17_s20, [#allocation3]  }
  0x18   :  { %s2112_s26 = scalar_lea.vmem %s39_s22, 128  ;;  %p2117_p11 = scmp.lt.s32.totalorder %s39_s22, %s39_s22 }
  0x19   :  { %p2113_p10 = scmp.ne.s32.totalorder %s39_s22, %s2112_s26  ;;  %p2118_p12 = scmp.lt.s32.totalorder %s2112_s26, %s2112_s26 }
  0x1b   :  { %p2119_p13 = por %p2118_p12, %p2117_p11 }
  0x1d   :  { %p2120_p0 = pnand %p2119_p13, %p2113_p10 }
  0x1f   :  { %2123 = shalt.err (!%p2120_p0)
}
  0x20   :  { %41 = dma.hbm_to_vmem [thread:$0]  %s2330_s2, 128, %s39_s22, [#allocation5]  }
  0x21   :  { %2124 = dma.done.wait [#allocation3], 192  }
  0x22   :  { %2125 = vsyncadd [#allocation3], 4294967104 }
  0x23   :  { %2126 = dma.done.wait [#allocation5], 11392  }
  0x24   :  { %2127 = vsyncadd [#allocation5], 4294955904  ;;  %v2133_v0 = vmov 0.0   ;;  %vm2134_vm0 = vmmov 0   ;;  %v1953_v1 = vld [vmem:[#allocation4 + $0xb8] sm:$0xff]   ;;  %v1955_v3 = vld [vmem:[#allocation4 + $0xb0] sm:$0xff]  }
  0x25   :  { %1766 = vmatprep.subr.bf16.mxu0 %v2133_v0  ;;  %1782 = vmatprep.mubr.msk.bf16.mxu0 %vm2134_vm0, %v2133_v0  ;;  %v1954_v2 = vld [vmem:[#allocation4 + $0x78] sm:$0xff]   ;;  %v1956_v4 = vld [vmem:[#allocation4 + $0x70] sm:$0xff]   ;;  %v1957_v5 = vld [vmem:[#allocation4 + $0xa8] sm:$0xff]  }
  0x26   :  { %1767 = vmatpush3.bf16.msra.mxu0 %v1953_v1  ;;  %1606 = vmatprep.subr.bf16.mxu1 %v1953_v1  ;;  %v1958_v6 = vld [vmem:[#allocation4 + $0x68] sm:$0xff]   ;;  %v1959_v7 = vld [vmem:[#allocation4 + $0xa0] sm:$0xff]   ;;  %v1961_v9 = vld [vmem:[#allocation4 + $0x98] sm:$0xff]  }
  0x27   :  { %1607 = vmatpush3.bf16.msra.mxu1 %v1954_v2  ;;  %1768 = vmatprep.subr.bf16.mxu0 %v2133_v0  ;;  %v1960_v8 = vld [vmem:[#allocation4 + $0x60] sm:$0xff]   ;;  %v1962_v10 = vld [vmem:[#allocation4 + $0x58] sm:$0xff]   ;;  %v1963_v11 = vld [vmem:[#allocation4 + $0x90] sm:$0xff]  }
  0x28   :  { %1608 = vmatprep.subr.bf16.mxu1 %v1955_v3  ;;  %v52_v12 = vld [vmem:[#allocation2] sm:$0xff]  ;;  %v1965_v16 = vld [vmem:[#allocation4 + $0x88] sm:$0xff]   ;;  %v1967_v18 = vld [vmem:[#allocation4 + $0x80] sm:$0xff]  }
  0x29   :  { %v181_v13 = vcombine.high %v52_v12, %v52_v12  ;;  %v1964_v14 = vld [vmem:[#allocation4 + $0x50] sm:$0xff]   ;;  %v1966_v17 = vld [vmem:[#allocation4 + $0x48] sm:$0xff]   ;;  %v1968_v19 = vld [vmem:[#allocation4 + $0x40] sm:$0xff]   ;;  %v2174_v21 = vpack.c.bf16 %v52_v12, %v52_v12 }
  0x2a   :  { %1769 = vmatpush3.bf16.msra.mxu0 %v1955_v3  ;;  %v1970_v20 = vld [vmem:[#allocation4 + $0x78] sm:$0xff]   ;;  %v1973_v24 = vld [vmem:[#allocation4 + $0x70] sm:$0xff]   ;;  %v1976_v27 = vld [vmem:[#allocation4 + $0x68] sm:$0xff]  }
  0x2b   :  { %1609 = vmatpush3.bf16.msra.mxu1 %v1956_v4  ;;  %1770 = vmatprep.subr.bf16.mxu0 %v2133_v0  ;;  %v183_v15 = vpack.c.bf16 %v181_v13, %v181_v13  ;;  %v1971_v22 = vld [vmem:[#allocation4 + $0x38] sm:$0xff]   ;;  %v1974_v25 = vld [vmem:[#allocation4 + $0x30] sm:$0xff]   ;;  %v1977_v28 = vld [vmem:[#allocation4 + $0x28] sm:$0xff]  }
  0x2c   :  { %1610 = vmatprep.subr.bf16.mxu1 %v1957_v5  ;;  %v1972_v23 = vld [vmem:[#allocation4 + $0xb8] sm:$0xff]   ;;  %v1975_v26 = vld [vmem:[#allocation4 + $0xb0] sm:$0xff]   ;;  %v1978_v29 = vld [vmem:[#allocation4 + $0xa8] sm:$0xff]  }
  0x2d   :  { %264 = vmatprep.mubr.bf16.mxu1 %v183_v15  ;;  %v1979_v30 = vld [vmem:[#allocation4 + $0x60] sm:$0xff]   ;;  %v1982_v33 = vld [vmem:[#allocation4 + $0x58] sm:$0xff]   ;;  %v1985_v36 = vld [vmem:[#allocation4 + $0x50] sm:$0xff]  }
  0x2e   :  { %1771 = vmatpush3.bf16.msra.mxu0 %v1957_v5  ;;  %v1980_v31 = vld [vmem:[#allocation4 + $0x20] sm:$0xff]   ;;  %v1983_v34 = vld [vmem:[#allocation4 + $0x18] sm:$0xff]   ;;  %v1986_v37 = vld [vmem:[#allocation4 + $0x10] sm:$0xff]  }
  0x2f   :  { %1611 = vmatpush3.bf16.msra.mxu1 %v1958_v6  ;;  %1772 = vmatprep.subr.bf16.mxu0 %v2133_v0  ;;  %v1981_v32 = vld [vmem:[#allocation4 + $0xa0] sm:$0xff]   ;;  %v1984_v35 = vld [vmem:[#allocation4 + $0x98] sm:$0xff]   ;;  %v1987_v38 = vld [vmem:[#allocation4 + $0x90] sm:$0xff]  }
  0x30   :  { %1612 = vmatprep.subr.bf16.mxu1 %v1959_v7  ;;  %v1988_v39 = vld [vmem:[#allocation4 + $0x48] sm:$0xff]   ;;  %v1991_v42 = vld [vmem:[#allocation4 + $0x40] sm:$0xff]   ;;  %v2187_v45 = vld [vmem:[#allocation2 + $0x8] sm:$0xf] }
  0x31   :  { %v1989_v40 = vld [vmem:[#allocation4 + $0x8] sm:$0xff]   ;;  %v1992_v43 = vld [vmem:[#allocation4] sm:$0xff]   ;;  %v2190_v46 = vld [vmem:[#allocation4 + $0x178] sm:$0xff]   ;;  %v320_v48 = vpack.c.bf16 %v2187_v45, %v2187_v45 }
  0x32   :  { %1773 = vmatpush3.bf16.msra.mxu0 %v1959_v7  ;;  %v1990_v41 = vld [vmem:[#allocation4 + $0x88] sm:$0xff]   ;;  %v1993_v44 = vld [vmem:[#allocation4 + $0x80] sm:$0xff]   ;;  %v1996_v47 = vld [vmem:[#allocation4 + $0x138] sm:$0xff]  }
  0x33   :  { %1613 = vmatpush3.bf16.msra.mxu1 %v1960_v8  ;;  %1774 = vmatprep.subr.bf16.mxu0 %v2133_v0  ;;  %v2195_v49 = vld [vmem:[#allocation4 + $0x170] sm:$0xff]   ;;  %v2203_v51 = vld [vmem:[#allocation4 + $0x168] sm:$0xff]   ;;  %v2213_v53 = vld [vmem:[#allocation4 + $0x160] sm:$0xff]  }
  0x34   :  { %1614 = vmatprep.subr.bf16.mxu1 %v1961_v9  ;;  %v2199_v50 = vld [vmem:[#allocation4 + $0x130] sm:$0xff]   ;;  %v2208_v52 = vld [vmem:[#allocation4 + $0x128] sm:$0xff]   ;;  %v2216_v54 = vld [vmem:[#allocation4 + $0x120] sm:$0xff]  }
  0x35   :  { %v2221_v55 = vld [vmem:[#allocation4 + $0x158] sm:$0xff]   ;;  %v2229_v57 = vld [vmem:[#allocation4 + $0x150] sm:$0xff]   ;;  %v2235_v58 = vld [vmem:[#allocation4 + $0x148] sm:$0xff]  }
  0x36   :  { %1775 = vmatpush3.bf16.msra.mxu0 %v1961_v9  ;;  %v2224_v56 = vld [vmem:[#allocation4 + $0x118] sm:$0xff]   ;;  %v2006_v59 = vld [vmem:[#allocation4 + $0x110] sm:$0xff]   ;;  %v2242_v60 = vld [vmem:[#allocation4 + $0x140] sm:$0xff]  }
  0x37   :  { %1615 = vmatpush3.bf16.msra.mxu1 %v1962_v10  ;;  %1776 = vmatprep.subr.bf16.mxu0 %v2133_v0  ;;  %v2008_v61 = vld [vmem:[#allocation4 + $0x108] sm:$0xff]   ;;  %v2010_v62 = vld [vmem:[#allocation4 + $0x100] sm:$0xff]   ;;  %v2009_v9 = vld [vmem:[#allocation4 + $0xf8] sm:$0xff]  }
  0x38   :  { %1616 = vmatprep.subr.bf16.mxu1 %v1963_v11  ;;  %v1485_v63 = vld [vmem:[#allocation6] ss:$0 sm:$0xff] }
  0x3a   :  { %1777 = vmatpush3.bf16.msra.mxu0 %v1963_v11 }
  0x3b   :  { %1617 = vmatpush3.bf16.msra.mxu1 %v1964_v14  ;;  %1778 = vmatprep.subr.bf16.mxu0 %v2133_v0 }
  0x3c   :  { %1618 = vmatprep.subr.bf16.mxu1 %v1965_v16 }
  0x3e   :  { %1779 = vmatpush3.bf16.msra.mxu0 %v1965_v16  ;;  %v2011_v16 = vld [vmem:[#allocation4 + $0xf0] sm:$0xff]  }
  0x3f   :  { %1619 = vmatpush3.bf16.msra.mxu1 %v1966_v17  ;;  %1780 = vmatprep.subr.bf16.mxu0 %v2133_v0 }
  0x40   :  { %1620 = vmatprep.subr.bf16.mxu1 %v1967_v18 }
  0x42   :  { %1781 = vmatpush3.bf16.msra.mxu0 %v1967_v18  ;;  %v2012_v18 = vld [vmem:[#allocation4 + $0xe8] sm:$0xff]  }
  0x43   :  { %1621 = vmatpush3.bf16.msra.mxu1 %v1968_v19  ;;  %1628 = vmatprep.subr.bf16.mxu0 %v1970_v20  ;;  %v2013_v19 = vld [vmem:[#allocation4 + $0xe0] sm:$0xff]   ;;  %v2014_v20 = vld [vmem:[#allocation4 + $0xd8] sm:$0xff]  }
  0x44   :  { %1786 = vmatprep.subr.bf16.mxu1 %v2133_v0 }
  0x45   :  { %1783 = vmatmul.mubr.bf16.vlgmr.msra.gmra.mxu0 %v2174_v21 }
  0x46   :  { %265 = vmatmul.mubr.bf16.vlgmr.msra.gmra.mxu1 %v2174_v21  ;;  %1629 = vmatpush3.bf16.msra.mxu0 %v1971_v22  ;;  %v2016_v22 = vld [vmem:[#allocation4 + $0xc8] sm:$0xff]  }
  0x47   :  { %1787 = vmatpush3.bf16.msra.mxu1 %v1972_v23  ;;  %1630 = vmatprep.subr.bf16.mxu0 %v1973_v24  ;;  %v2017_v24 = vld [vmem:[#allocation4 + $0xc0] sm:$0xff]  }
  0x48   :  { %1788 = vmatprep.subr.bf16.mxu1 %v2133_v0  ;;  %497 = vmatprep.mubr.bf16.mxu0 %v183_v15 }
  0x49   :  { %1802 = vmatprep.mubr.msk.bf16.mxu1 %vm2134_vm0, %v2133_v0 }
  0x4a   :  { %1631 = vmatpush3.bf16.msra.mxu0 %v1974_v25 }
  0x4b   :  { %1789 = vmatpush3.bf16.msra.mxu1 %v1975_v26  ;;  %1632 = vmatprep.subr.bf16.mxu0 %v1976_v27 }
  0x4c   :  { %1790 = vmatprep.subr.bf16.mxu1 %v2133_v0 }
  0x4e   :  { %1633 = vmatpush3.bf16.msra.mxu0 %v1977_v28 }
  0x4f   :  { %1791 = vmatpush3.bf16.msra.mxu1 %v1978_v29  ;;  %1634 = vmatprep.subr.bf16.mxu0 %v1979_v30 }
  0x50   :  { %1792 = vmatprep.subr.bf16.mxu1 %v2133_v0 }
  0x52   :  { %1635 = vmatpush3.bf16.msra.mxu0 %v1980_v31 }
  0x53   :  { %1793 = vmatpush3.bf16.msra.mxu1 %v1981_v32  ;;  %1636 = vmatprep.subr.bf16.mxu0 %v1982_v33 }
  0x54   :  { %1794 = vmatprep.subr.bf16.mxu1 %v2133_v0 }
  0x56   :  { %1637 = vmatpush3.bf16.msra.mxu0 %v1983_v34 }
  0x57   :  { %1795 = vmatpush3.bf16.msra.mxu1 %v1984_v35  ;;  %1638 = vmatprep.subr.bf16.mxu0 %v1985_v36 }
  0x58   :  { %1796 = vmatprep.subr.bf16.mxu1 %v2133_v0 }
  0x5a   :  { %1639 = vmatpush3.bf16.msra.mxu0 %v1986_v37  ;;  %v2018_v37 = vld [vmem:[#allocation4 + $0x1b8] sm:$0xff]  }
  0x5b   :  { %1797 = vmatpush3.bf16.msra.mxu1 %v1987_v38  ;;  %1640 = vmatprep.subr.bf16.mxu0 %v1988_v39  ;;  %v2019_v38 = vld [vmem:[#allocation4 + $0x1b0] sm:$0xff]   ;;  %v2020_v39 = vld [vmem:[#allocation4 + $0x1a8] sm:$0xff]  }
  0x5c   :  { %1798 = vmatprep.subr.bf16.mxu1 %v2133_v0 }
  0x5e   :  { %1641 = vmatpush3.bf16.msra.mxu0 %v1989_v40  ;;  %v2021_v40 = vld [vmem:[#allocation4 + $0x1a0] sm:$0xff]  }
  0x5f   :  { %1799 = vmatpush3.bf16.msra.mxu1 %v1990_v41  ;;  %1642 = vmatprep.subr.bf16.mxu0 %v1991_v42  ;;  %v2022_v41 = vld [vmem:[#allocation4 + $0x198] sm:$0xff]   ;;  %v2023_v42 = vld [vmem:[#allocation4 + $0x190] sm:$0xff]  }
  0x60   :  { %1800 = vmatprep.subr.bf16.mxu1 %v2133_v0 }
  0x62   :  { %1643 = vmatpush3.bf16.msra.mxu0 %v1992_v43  ;;  %v2024_v43 = vld [vmem:[#allocation4 + $0x188] sm:$0xff]  }
  0x63   :  { %1801 = vmatpush3.bf16.msra.mxu1 %v1993_v44  ;;  %1806 = vmatprep.subr.bf16.mxu0 %v2133_v0  ;;  %v2025_v44 = vld [vmem:[#allocation4 + $0x180] sm:$0xff]  }
  0x64   :  { %1668 = vmatprep.subr.bf16.mxu1 %v2190_v46 }
  0x65   :  { %498 = vmatmul.mubr.bf16.vlgmr.msra.gmra.mxu0 %v2174_v21  ;;  %v2015_v21 = vld [vmem:[#allocation4 + $0xd0] sm:$0xff]  }
  0x66   :  { %1803 = vmatmul.mubr.bf16.vlgmr.msra.gmra.mxu1 %v320_v48  ;;  %1807 = vmatpush3.bf16.msra.mxu0 %v2190_v46  ;;  %v2028_v48 = vld [vmem:[#allocation4 + $0x1e8] sm:$0xff]  }
  0x67   :  { %1808 = vmatprep.subr.bf16.mxu0 %v2133_v0  ;;  %1669 = vmatpush3.bf16.msra.mxu1 %v1996_v47 }
  0x68   :  { %1670 = vmatprep.subr.bf16.mxu1 %v2195_v49  ;;  %1822 = vmatprep.mubr.msk.bf16.mxu0 %vm2134_vm0, %v2133_v0 }
  0x6a   :  { %1809 = vmatpush3.bf16.msra.mxu0 %v2195_v49 }
  0x6b   :  { %1810 = vmatprep.subr.bf16.mxu0 %v2133_v0  ;;  %1671 = vmatpush3.bf16.msra.mxu1 %v2199_v50 }
  0x6c   :  { %1672 = vmatprep.subr.bf16.mxu1 %v2203_v51 }
  0x6e   :  { %1811 = vmatpush3.bf16.msra.mxu0 %v2203_v51 }
  0x6f   :  { %1812 = vmatprep.subr.bf16.mxu0 %v2133_v0  ;;  %1673 = vmatpush3.bf16.msra.mxu1 %v2208_v52 }
  0x70   :  { %1674 = vmatprep.subr.bf16.mxu1 %v2213_v53 }
  0x72   :  { %1813 = vmatpush3.bf16.msra.mxu0 %v2213_v53 }
  0x73   :  { %1814 = vmatprep.subr.bf16.mxu0 %v2133_v0  ;;  %1675 = vmatpush3.bf16.msra.mxu1 %v2216_v54 }
  0x74   :  { %1676 = vmatprep.subr.bf16.mxu1 %v2221_v55 }
  0x76   :  { %1815 = vmatpush3.bf16.msra.mxu0 %v2221_v55 }
  0x77   :  { %1816 = vmatprep.subr.bf16.mxu0 %v2133_v0  ;;  %1677 = vmatpush3.bf16.msra.mxu1 %v2224_v56 }
  0x78   :  { %1678 = vmatprep.subr.bf16.mxu1 %v2229_v57 }
  0x7a   :  { %1817 = vmatpush3.bf16.msra.mxu0 %v2229_v57 }
  0x7b   :  { %1818 = vmatprep.subr.bf16.mxu0 %v2133_v0  ;;  %1679 = vmatpush3.bf16.msra.mxu1 %v2006_v59 }
  0x7c   :  { %1680 = vmatprep.subr.bf16.mxu1 %v2235_v58 }
  0x7e   :  { %1819 = vmatpush3.bf16.msra.mxu0 %v2235_v58 }
  0x7f   :  { %1820 = vmatprep.subr.bf16.mxu0 %v2133_v0  ;;  %1681 = vmatpush3.bf16.msra.mxu1 %v2008_v61 }
  0x80   :  { %1682 = vmatprep.subr.bf16.mxu1 %v2242_v60 }
  0x82   :  { %1821 = vmatpush3.bf16.msra.mxu0 %v2242_v60 }
  0x83   :  { %1690 = vmatprep.subr.bf16.mxu0 %v1996_v47  ;;  %1683 = vmatpush3.bf16.msra.mxu1 %v2010_v62  ;;  %v2027_v47 = vld [vmem:[#allocation4 + $0x1f0] sm:$0xff]  }
  0x84   :  { %1826 = vmatprep.subr.bf16.mxu1 %v2133_v0 }
 0x105   :  { %v158_v1 = vpop.f32.mrf.mxu0 }
 0x106   :  { %v159_v2 = vadd.f32 %v1485_v63, %v158_v1  ;;  %v1622_v3 = vpop.f32.mrf.mxu1 }
 0x107   :  { %v1784_v4 = vpop.f32.mrf.mxu0 }
 0x108   :  { %v545_v5 = vmax.f32 %v159_v2, 0.0  ;;  %v1623_v6 = vpop.f32.mrf.mxu1 }
 0x109   :  { %v1624_v7 = vadd.f32 %v1623_v6, %v1622_v3  ;;  %v161_v8 = vpop.f32.mrf.mxu0 }
 0x10a   :  { %v565_v10 = vpack.c.bf16 %v545_v5, %v545_v5  ;;  %v1625_v11 = vpop.f32.mrf.mxu1 }
 0x10b   :  { %v267_v12 = vadd.f32 %v1624_v7, %v1485_v63  ;;  %v1785_v13 = vpop.f32.mrf.mxu0 }
 0x10c   :  { %v1626_v14 = vpop.f32.mrf.mxu1  ;;  %1823 = vmatmul.mubr.bf16.vlgmr.msra.gmra.mxu0 %v565_v10 }
 0x10d   :  { %v546_v15 = vmax.f32 %v267_v12, 0.0  ;;  %1691 = vmatpush3.bf16.msra.mxu0 %v2009_v9 }
 0x10e   :  { %1692 = vmatprep.subr.bf16.mxu0 %v2199_v50  ;;  %v2030_v50 = vld [vmem:[#allocation4 + $0x1d8] sm:$0xff]  }
 0x10f   :  { %v674_v17 = vpack.c.bf16 %v546_v15, %v546_v15 }
 0x111   :  { %1693 = vmatpush3.bf16.msra.mxu0 %v2011_v16  ;;  %755 = vmatprep.mubr.bf16.mxu1 %v674_v17 }
 0x112   :  { %860 = vmatprep.mubr.bf16.mxu0 %v674_v17  ;;  %756 = vmatmul.mubr.bf16.vlgmr.msra.gmra.mxu1 %v565_v10 }
 0x113   :  { %1694 = vmatprep.subr.bf16.mxu0 %v2208_v52  ;;  %1827 = vmatpush3.bf16.msra.mxu1 %v2190_v46  ;;  %v2026_v46 = vld [vmem:[#allocation4 + $0x1f8] sm:$0xff]  }
 0x114   :  { %1828 = vmatprep.subr.bf16.mxu1 %v2133_v0  ;;  %1842 = vmatprep.mubr.msk.bf16.mxu1 %vm2134_vm0, %v2133_v0 }
 0x115   :  { %1695 = vmatpush3.bf16.msra.mxu0 %v2012_v18 }
 0x116   :  { %1696 = vmatprep.subr.bf16.mxu0 %v2216_v54 }
 0x117   :  { %1829 = vmatpush3.bf16.msra.mxu1 %v2195_v49  ;;  %v2029_v49 = vld [vmem:[#allocation4 + $0x1e0] sm:$0xff]  }
 0x118   :  { %1830 = vmatprep.subr.bf16.mxu1 %v2133_v0 }
 0x119   :  { %1697 = vmatpush3.bf16.msra.mxu0 %v2013_v19  ;;  %v2032_v19 = vld [vmem:[#allocation4 + $0x1c8] sm:$0xff]  }
 0x11a   :  { %1698 = vmatprep.subr.bf16.mxu0 %v2224_v56 }
 0x11b   :  { %1831 = vmatpush3.bf16.msra.mxu1 %v2203_v51  ;;  %v2031_v51 = vld [vmem:[#allocation4 + $0x1d0] sm:$0xff]  }
 0x11c   :  { %1832 = vmatprep.subr.bf16.mxu1 %v2133_v0 }
 0x11d   :  { %1699 = vmatpush3.bf16.msra.mxu0 %v2014_v20  ;;  %v2033_v20 = vld [vmem:[#allocation4 + $0x1c0] sm:$0xff]  }
 0x11e   :  { %1700 = vmatprep.subr.bf16.mxu0 %v2006_v59 }
 0x11f   :  { %1833 = vmatpush3.bf16.msra.mxu1 %v2213_v53 }
 0x120   :  { %1834 = vmatprep.subr.bf16.mxu1 %v2133_v0 }
 0x121   :  { %1701 = vmatpush3.bf16.msra.mxu0 %v2015_v21  ;;  %v1551_v21 = vld [vmem:[#allocation6 + $0x2] ss:$0 sm:$0xff] }
 0x122   :  { %1702 = vmatprep.subr.bf16.mxu0 %v2008_v61  ;;  %v1526_v61 = vld [vmem:[#allocation6 + $0x1] ss:$0 sm:$0xff] }
 0x123   :  { %1835 = vmatpush3.bf16.msra.mxu1 %v2221_v55 }
 0x124   :  { %1836 = vmatprep.subr.bf16.mxu1 %v2133_v0 }
 0x125   :  { %1703 = vmatpush3.bf16.msra.mxu0 %v2016_v22  ;;  %v1644_v23 = vpop.f32.mrf.mxu0 }
 0x126   :  { %v539_v25 = vpop.f32.mrf.mxu1  ;;  %1704 = vmatprep.subr.bf16.mxu0 %v2010_v62 }
 0x127   :  { %v1645_v26 = vpop.f32.mrf.mxu0  ;;  %1837 = vmatpush3.bf16.msra.mxu1 %v2229_v57 }
 0x128   :  { %v1646_v27 = vadd.f32 %v1645_v26, %v1644_v23  ;;  %v1804_v28 = vpop.f32.mrf.mxu1  ;;  %1838 = vmatprep.subr.bf16.mxu1 %v2133_v0 }
 0x129   :  { %1705 = vmatpush3.bf16.msra.mxu0 %v2017_v24  ;;  %v1647_v29 = vpop.f32.mrf.mxu0 }
 0x12a   :  { %v500_v30 = vadd.f32 %v1646_v27, %v1485_v63  ;;  %v542_v31 = vpop.f32.mrf.mxu1  ;;  %1846 = vmatprep.subr.bf16.mxu0 %v2133_v0  ;;  %v2034_v29 = vld [vmem:[#allocation4 + $0x238] sm:$0xff]  }
 0x12b   :  { %v1648_v32 = vpop.f32.mrf.mxu0  ;;  %1839 = vmatpush3.bf16.msra.mxu1 %v2235_v58  ;;  %v2036_v31 = vld [vmem:[#allocation4 + $0x228] sm:$0xff]  }
 0x12c   :  { %v540_v33 = vadd.f32 %v539_v25, %v500_v30  ;;  %861 = vmatmul.mubr.bf16.vlgmr.msra.gmra.mxu0 %v565_v10  ;;  %v1805_v34 = vpop.f32.mrf.mxu1  ;;  %1840 = vmatprep.subr.bf16.mxu1 %v2133_v0  ;;  %v2035_v30 = vld [vmem:[#allocation4 + $0x230] sm:$0xff]   ;;  %v2037_v32 = vld [vmem:[#allocation4 + $0x220] sm:$0xff]  }
 0x12d   :  { %1862 = vmatprep.mubr.msk.bf16.mxu0 %vm2134_vm0, %v2133_v0  ;;  %1847 = vmatpush3.bf16.msra.mxu0 %v2018_v37  ;;  %v2039_v34 = vld [vmem:[#allocation4 + $0x210] sm:$0xff]   ;;  %v2042_v37 = vld [vmem:[#allocation4 + $0x278] sm:$0xff]  }
 0x12e   :  { %v547_v35 = vmax.f32 %v540_v33, 0.0  ;;  %1848 = vmatprep.subr.bf16.mxu0 %v2133_v0  ;;  %v2038_v33 = vld [vmem:[#allocation4 + $0x218] sm:$0xff]  }
 0x12f   :  { %1841 = vmatpush3.bf16.msra.mxu1 %v2242_v60 }
 0x130   :  { %v779_v36 = vpack.c.bf16 %v547_v35, %v547_v35  ;;  %1866 = vmatprep.subr.bf16.mxu1 %v2133_v0  ;;  %v2040_v35 = vld [vmem:[#allocation4 + $0x208] sm:$0xff]  }
 0x131   :  { %1849 = vmatpush3.bf16.msra.mxu0 %v2019_v38  ;;  %v2043_v38 = vld [vmem:[#allocation4 + $0x270] sm:$0xff]  }
 0x132   :  { %1843 = vmatmul.mubr.bf16.vlgmr.msra.gmra.mxu1 %v779_v36  ;;  %1850 = vmatprep.subr.bf16.mxu0 %v2133_v0  ;;  %v2041_v36 = vld [vmem:[#allocation4 + $0x200] sm:$0xff]  }
 0x133   :  { %1882 = vmatprep.mubr.msk.bf16.mxu1 %vm2134_vm0, %v2133_v0  ;;  %1867 = vmatpush3.bf16.msra.mxu1 %v2026_v46 }
 0x134   :  { %1868 = vmatprep.subr.bf16.mxu1 %v2133_v0 }
 0x135   :  { %1851 = vmatpush3.bf16.msra.mxu0 %v2020_v39  ;;  %v2044_v39 = vld [vmem:[#allocation4 + $0x268] sm:$0xff]  }
 0x136   :  { %1852 = vmatprep.subr.bf16.mxu0 %v2133_v0 }
 0x137   :  { %1869 = vmatpush3.bf16.msra.mxu1 %v2027_v47 }
 0x138   :  { %1870 = vmatprep.subr.bf16.mxu1 %v2133_v0 }
 0x139   :  { %1853 = vmatpush3.bf16.msra.mxu0 %v2021_v40  ;;  %v2045_v40 = vld [vmem:[#allocation4 + $0x260] sm:$0xff]  }
 0x13a   :  { %1854 = vmatprep.subr.bf16.mxu0 %v2133_v0 }
 0x13b   :  { %1871 = vmatpush3.bf16.msra.mxu1 %v2028_v48 }
 0x13c   :  { %1872 = vmatprep.subr.bf16.mxu1 %v2133_v0 }
 0x13d   :  { %1855 = vmatpush3.bf16.msra.mxu0 %v2022_v41  ;;  %v2046_v41 = vld [vmem:[#allocation4 + $0x258] sm:$0xff]  }
 0x13e   :  { %1856 = vmatprep.subr.bf16.mxu0 %v2133_v0 }
 0x13f   :  { %1873 = vmatpush3.bf16.msra.mxu1 %v2029_v49 }
 0x140   :  { %1874 = vmatprep.subr.bf16.mxu1 %v2133_v0 }
 0x141   :  { %1857 = vmatpush3.bf16.msra.mxu0 %v2023_v42  ;;  %v2047_v42 = vld [vmem:[#allocation4 + $0x250] sm:$0xff]  }
 0x142   :  { %1858 = vmatprep.subr.bf16.mxu0 %v2133_v0 }
 0x143   :  { %1875 = vmatpush3.bf16.msra.mxu1 %v2030_v50 }
 0x144   :  { %1876 = vmatprep.subr.bf16.mxu1 %v2133_v0 }
 0x145   :  { %1859 = vmatpush3.bf16.msra.mxu0 %v2024_v43  ;;  %v1560_v43 = vld [vmem:[#allocation6 + $0x3] ss:$0 sm:$0xff] }
 0x146   :  { %1860 = vmatprep.subr.bf16.mxu0 %v2133_v0 }
 0x147   :  { %1877 = vmatpush3.bf16.msra.mxu1 %v2031_v51 }
 0x148   :  { %1878 = vmatprep.subr.bf16.mxu1 %v2133_v0 }
 0x149   :  { %1861 = vmatpush3.bf16.msra.mxu0 %v2025_v44 }
 0x14a   :  { %1886 = vmatprep.subr.bf16.mxu0 %v2133_v0 }
 0x14b   :  { %1879 = vmatpush3.bf16.msra.mxu1 %v2032_v19 }
 0x14c   :  { %1880 = vmatprep.subr.bf16.mxu1 %v2133_v0 }
 0x14f   :  { %1881 = vmatpush3.bf16.msra.mxu1 %v2033_v20 }
 0x150   :  { %1906 = vmatprep.subr.bf16.mxu1 %v2133_v0 }
 0x1cc   :  { %v652_v52 = vpop.f32.mrf.mxu0 }
 0x1cd   :  { %v653_v2 = vadd.f32 %v1526_v61, %v652_v52 }
 0x1ce   :  { %v1824_v53 = vpop.f32.mrf.mxu0 }
 0x1cf   :  { %v908_v9 = vmax.f32 %v653_v2, 0.0  ;;  %v2055_v2 = vld [vmem:[#allocation4 + $0x290] sm:$0xff]  }
 0x1d0   :  { %v655_v54 = vpop.f32.mrf.mxu0 }
 0x1d2   :  { %v1825_v55 = vpop.f32.mrf.mxu0  ;;  %v1684_v56 = vpop.f32.mrf.mxu1 }
 0x1d4   :  { %v1685_v57 = vpop.f32.mrf.mxu1 }
 0x1d5   :  { %v1686_v60 = vadd.f32 %v1685_v57, %v1684_v56 }
 0x1d6   :  { %v1687_v58 = vpop.f32.mrf.mxu1 }
 0x1d7   :  { %v758_v63 = vadd.f32 %v1686_v60, %v1526_v61  ;;  %v2049_v60 = vld [vmem:[#allocation4 + $0x240] sm:$0xff]  }
 0x1d8   :  { %v1688_v59 = vpop.f32.mrf.mxu1 }
 0x1d9   :  { %v909_v5 = vmax.f32 %v758_v63, 0.0  ;;  %v2048_v59 = vld [vmem:[#allocation4 + $0x248] sm:$0xff]  }
 0x1da   :  { %v2052_v63 = vld [vmem:[#allocation4 + $0x2a8] sm:$0xff]  }
 0x1db   :  { %v911_v12 = vadd.f32 %v909_v5, %v908_v9 }
 0x1ec   :  { %v1706_v62 = vpop.f32.mrf.mxu0 }
 0x1ee   :  { %v1707_v1 = vpop.f32.mrf.mxu0 }
 0x1ef   :  { %v1708_v3 = vadd.f32 %v1707_v1, %v1706_v62  ;;  %v2051_v62 = vld [vmem:[#allocation4 + $0x2b0] sm:$0xff]   ;;  %v2054_v1 = vld [vmem:[#allocation4 + $0x298] sm:$0xff]  }
 0x1f0   :  { %v1709_v4 = vpop.f32.mrf.mxu0 }
 0x1f1   :  { %v863_v6 = vadd.f32 %v1708_v3, %v1526_v61  ;;  %v2050_v61 = vld [vmem:[#allocation4 + $0x2b8] sm:$0xff]   ;;  %v1570_v3 = vld [vmem:[#allocation6 + $0x4] ss:$0 sm:$0xff] }
 0x1f2   :  { %v1710_v7 = vpop.f32.mrf.mxu0  ;;  %v902_v8 = vpop.f32.mrf.mxu1 }
 0x1f3   :  { %v903_v10 = vadd.f32 %v902_v8, %v863_v6 }
 0x1f4   :  { %v1844_v11 = vpop.f32.mrf.mxu1 }
 0x1f5   :  { %v2289_v13 = vmax.f32 %v903_v10, 0.0  ;;  %v2056_v11 = vld [vmem:[#allocation4 + $0x288] sm:$0xff]  }
 0x1f6   :  { %v905_v14 = vpop.f32.mrf.mxu1 }
 0x1f7   :  { %v912_v15 = vadd.f32 %v911_v12, %v2289_v13  ;;  %v2057_v12 = vld [vmem:[#allocation4 + $0x280] sm:$0xff]  }
 0x1f8   :  { %v1845_v16 = vpop.f32.mrf.mxu1 }
 0x1f9   :  { %v913_v17 = vmul.f32 0.33333334, %v912_v15 }
 0x1fb   :  { %v930_v18 = vpack.c.bf16 %v913_v17, %v913_v17 }
 0x1fd   :  { %1863 = vmatmul.mubr.bf16.vlgmr.msra.gmra.mxu0 %v930_v18 }
 0x1fe   :  { %1902 = vmatprep.mubr.msk.bf16.mxu0 %vm2134_vm0, %v2133_v0  ;;  %1887 = vmatpush3.bf16.msra.mxu0 %v2034_v29 }
 0x1ff   :  { %1888 = vmatprep.subr.bf16.mxu0 %v2133_v0 }
 0x202   :  { %1889 = vmatpush3.bf16.msra.mxu0 %v2035_v30 }
 0x203   :  { %1890 = vmatprep.subr.bf16.mxu0 %v2133_v0 }
 0x206   :  { %1891 = vmatpush3.bf16.msra.mxu0 %v2036_v31 }
 0x207   :  { %1892 = vmatprep.subr.bf16.mxu0 %v2133_v0 }
 0x20a   :  { %1893 = vmatpush3.bf16.msra.mxu0 %v2037_v32 }
 0x20b   :  { %1894 = vmatprep.subr.bf16.mxu0 %v2133_v0 }
 0x20e   :  { %1895 = vmatpush3.bf16.msra.mxu0 %v2038_v33 }
 0x20f   :  { %1896 = vmatprep.subr.bf16.mxu0 %v2133_v0 }
 0x212   :  { %1897 = vmatpush3.bf16.msra.mxu0 %v2039_v34 }
 0x213   :  { %1898 = vmatprep.subr.bf16.mxu0 %v2133_v0 }
 0x216   :  { %1899 = vmatpush3.bf16.msra.mxu0 %v2040_v35 }
 0x217   :  { %1900 = vmatprep.subr.bf16.mxu0 %v2133_v0 }
 0x21a   :  { %1901 = vmatpush3.bf16.msra.mxu0 %v2041_v36 }
 0x21b   :  { %1926 = vmatprep.subr.bf16.mxu0 %v2133_v0 }
 0x2bd   :  { %v1018_v22 = vpop.f32.mrf.mxu0 }
 0x2be   :  { %v1019_v23 = vadd.f32 %v1551_v21, %v1018_v22  ;;  %v1588_v21 = vld [vmem:[#allocation6 + $0x6] ss:$0 sm:$0xff] }
 0x2bf   :  { %v1864_v24 = vpop.f32.mrf.mxu0 }
 0x2c0   :  { %v1024_v25 = vmax.f32 %v1019_v23, 0.0 }
 0x2c1   :  { %v1021_v26 = vpop.f32.mrf.mxu0 }
 0x2c2   :  { %v1041_v27 = vpack.c.bf16 %v1024_v25, %v1024_v25 }
 0x2c3   :  { %v1865_v28 = vpop.f32.mrf.mxu0 }
 0x2c4   :  { %1883 = vmatmul.mubr.bf16.vlgmr.msra.gmra.mxu1 %v1041_v27 }
 0x2c5   :  { %1922 = vmatprep.mubr.msk.bf16.mxu1 %vm2134_vm0, %v2133_v0  ;;  %1907 = vmatpush3.bf16.msra.mxu1 %v2042_v37 }
 0x2c6   :  { %1908 = vmatprep.subr.bf16.mxu1 %v2133_v0 }
 0x2c9   :  { %1909 = vmatpush3.bf16.msra.mxu1 %v2043_v38 }
 0x2ca   :  { %1910 = vmatprep.subr.bf16.mxu1 %v2133_v0 }
 0x2cd   :  { %1911 = vmatpush3.bf16.msra.mxu1 %v2044_v39 }
 0x2ce   :  { %1912 = vmatprep.subr.bf16.mxu1 %v2133_v0 }
 0x2d1   :  { %1913 = vmatpush3.bf16.msra.mxu1 %v2045_v40 }
 0x2d2   :  { %1914 = vmatprep.subr.bf16.mxu1 %v2133_v0 }
 0x2d5   :  { %1915 = vmatpush3.bf16.msra.mxu1 %v2046_v41 }
 0x2d6   :  { %1916 = vmatprep.subr.bf16.mxu1 %v2133_v0 }
 0x2d9   :  { %1917 = vmatpush3.bf16.msra.mxu1 %v2047_v42 }
 0x2da   :  { %1918 = vmatprep.subr.bf16.mxu1 %v2133_v0 }
 0x2dd   :  { %1919 = vmatpush3.bf16.msra.mxu1 %v2048_v59 }
 0x2de   :  { %1920 = vmatprep.subr.bf16.mxu1 %v2133_v0 }
 0x2e1   :  { %1921 = vmatpush3.bf16.msra.mxu1 %v2049_v60 }
 0x384   :  { %v1129_v44 = vpop.f32.mrf.mxu1 }
 0x385   :  { %v1130_v46 = vadd.f32 %v1560_v43, %v1129_v44 }
 0x386   :  { %v1884_v47 = vpop.f32.mrf.mxu1 }
 0x387   :  { %v1569_v48 = vmul.f32 -1.442695, %v1130_v46 }
 0x388   :  { %v1132_v49 = vpop.f32.mrf.mxu1 }
 0x389   :  { %2058 = vpow2.f32 %v1569_v48 }
 0x38a   :  { %v1885_v50 = vpop.f32.mrf.mxu1 }
 0x396   :  { %v2059_v51 = vpop.eup %2058 }
 0x397   :  { %v1138_v52 = vadd.f32 1.0, %v2059_v51 }
 0x399   :  { %2060 = vrcp.f32 %v1138_v52 }
 0x3a6   :  { %v2061_v53 = vpop.eup %2060 }
 0x3a7   :  { %v1141_v54 = vmul.f32 %v2061_v53, %v2289_v13 }
 0x3a9   :  { %v1142_v55 = vmul.f32 %v1141_v54, %v2289_v13  ;;  %v1579_v13 = vld [vmem:[#allocation6 + $0x5] ss:$0 sm:$0xff] }
 0x3ab   :  { %v1143_v56 = vadd.f32 %v1142_v55, %v2187_v45  ;;  %v2053_v45 = vld [vmem:[#allocation4 + $0x2a0] sm:$0xff]  }
 0x3ad   :  { %v1144_v57 = vmax.f32 %v1143_v56, 0.0 }
 0x3af   :  { %v1161_v58 = vpack.c.bf16 %v1144_v57, %v1144_v57 }
 0x3b1   :  { %1903 = vmatmul.mubr.bf16.vlgmr.msra.gmra.mxu0 %v1161_v58 }
 0x3b2   :  { %1942 = vmatprep.mubr.msk.bf16.mxu0 %vm2134_vm0, %v2133_v0  ;;  %1927 = vmatpush3.bf16.msra.mxu0 %v2050_v61 }
 0x3b3   :  { %1928 = vmatprep.subr.bf16.mxu0 %v2133_v0 }
 0x3b6   :  { %1929 = vmatpush3.bf16.msra.mxu0 %v2051_v62 }
 0x3b7   :  { %1930 = vmatprep.subr.bf16.mxu0 %v2133_v0 }
 0x3ba   :  { %1931 = vmatpush3.bf16.msra.mxu0 %v2052_v63 }
 0x3bb   :  { %1932 = vmatprep.subr.bf16.mxu0 %v2133_v0 }
 0x3be   :  { %1933 = vmatpush3.bf16.msra.mxu0 %v2053_v45 }
 0x3bf   :  { %1934 = vmatprep.subr.bf16.mxu0 %v2133_v0 }
 0x3c2   :  { %1935 = vmatpush3.bf16.msra.mxu0 %v2054_v1 }
 0x3c3   :  { %1936 = vmatprep.subr.bf16.mxu0 %v2133_v0 }
 0x3c6   :  { %1937 = vmatpush3.bf16.msra.mxu0 %v2055_v2 }
 0x3c7   :  { %1938 = vmatprep.subr.bf16.mxu0 %v2133_v0 }
 0x3ca   :  { %1939 = vmatpush3.bf16.msra.mxu0 %v2056_v11 }
 0x3cb   :  { %1940 = vmatprep.subr.bf16.mxu0 %v2133_v0 }
 0x3ce   :  { %1941 = vmatpush3.bf16.msra.mxu0 %v2057_v12 }
 0x471   :  { %v1249_v4 = vpop.f32.mrf.mxu0 }
 0x472   :  { %v1250_v5 = vadd.f32 %v1570_v3, %v1249_v4 }
 0x473   :  { %v1904_v6 = vpop.f32.mrf.mxu0 }
 0x474   :  { %v1255_v7 = vmax.f32 %v1250_v5, 0.0 }
 0x475   :  { %v1252_v8 = vpop.f32.mrf.mxu0 }
 0x476   :  { %v1272_v9 = vpack.c.bf16 %v1255_v7, %v1255_v7 }
 0x477   :  { %v1905_v10 = vpop.f32.mrf.mxu0 }
 0x478   :  { %1923 = vmatmul.mubr.bf16.vlgmr.msra.gmra.mxu1 %v1272_v9 }
 0x538   :  { %v1360_v14 = vpop.f32.mrf.mxu1 }
 0x539   :  { %v1361_v15 = vadd.f32 %v1579_v13, %v1360_v14 }
 0x53a   :  { %v1924_v16 = vpop.f32.mrf.mxu1 }
 0x53b   :  { %v1366_v17 = vmax.f32 %v1361_v15, 0.0 }
 0x53c   :  { %v1363_v18 = vpop.f32.mrf.mxu1 }
 0x53d   :  { %v1383_v19 = vpack.c.bf16 %v1366_v17, %v1366_v17 }
 0x53e   :  { %v1925_v20 = vpop.f32.mrf.mxu1 }
 0x53f   :  { %1943 = vmatmul.mubr.bf16.vlgmr.msra.gmra.mxu0 %v1383_v19 }
 0x5ff   :  { %v1471_v22 = vpop.f32.mrf.mxu0 }
 0x600   :  { %v1472_v23 = vadd.f32 %v1588_v21, %v1471_v22 }
 0x601   :  { %v1944_v24 = vpop.f32.mrf.mxu0 }
 0x602   :  { %2062 = vtanh.f32 %v1472_v23 }
 0x603   :  { %v1474_v25 = vpop.f32.mrf.mxu0 }
 0x605   :  { %v1945_v26 = vpop.f32.mrf.mxu0 }
 0x60f   :  { %v2063_v27 = vpop.eup %2062 }
 0x610   :  { %1478 = vst [vmem:[%s2331_s3] sm:$0xf] %v2063_v27 }
 0x611   :  { %1483 = vsyncpa [#allocation3], 1 }
 0x612   :  { %1484 = vsyncpa [#allocation5], 1 }

</bundles_post_ra>
